<compile_context>
chip_gen: v5e
topology: v5e:2x2
jax: 0.10.0
libtpu: 0.0.40
codegen_flags: <defaults>
</compile_context>

<pallas_src>
from functools import partial

import jax
import jax.numpy as jnp
from jax.experimental import pallas as pl
from jax.experimental.pallas import tpu as pltpu


# --------------------------------------------------------------------------- #
# Kernel: one (batch-block, time-step) grid point
# --------------------------------------------------------------------------- #
def _spiking_kernel(scal_ref,   # SMEM (3,) f32 : [threshold, dt, ref_period]
                    x_ref,      # VMEM (BH, KH*Wp*Cin) bf16 : im2row spikes, this step
                    w_ref,      # VMEM (KH*Wp*Cin, Wout*Cout) bf16 : Toeplitz weight
                    mem_in,     # VMEM (BH, WC) f32 : incoming membrane state
                    cd_in,      # VMEM (BH, WC) f32 : incoming cooldown state
                    sum_in,     # VMEM (BH, WC) f32 : incoming spike sum
                    spk_out,    # VMEM (BH, WC) f32 : spikes for this time step
                    mem_out,    # VMEM (BH, WC) f32 : resident membrane accumulator
                    cd_out,     # VMEM (BH, WC) f32 : resident cooldown accumulator
                    sum_out):   # VMEM (BH, WC) f32 : resident spike-sum accumulator
    t = pl.program_id(1)

    # Seed the VMEM-resident state accumulators from the state inputs at t == 0.
    # (Output blocks have a constant block index along the T axis, so they stay
    #  resident in VMEM across all T iterations of this batch block.)
    @pl.when(t == 0)
    def _():
        mem_out[...] = mem_in[...]
        cd_out[...] = cd_in[...]
        sum_out[...] = sum_in[...]

    # ---- convolution: one MXU matmul, K = KH*Wp*Cin, lane-dense result -------
    impulse = jnp.dot(x_ref[...], w_ref[...], preferred_element_type=jnp.float32)

    # ---- spiking neuron dynamics (VPU elementwise, f32) -----------------------
    threshold = scal_ref[0]
    dt = scal_ref[1]
    ref_period = scal_ref[2]

    mem = mem_out[...]
    cd = cd_out[...]

    impulse = jnp.where(cd > 0.0, 0.0, impulse)     # refractory gating
    mem = mem + impulse
    spiked = mem >= threshold
    mem = jnp.where(spiked, 0.0, mem)               # reset on spike
    cd = jnp.maximum(jnp.where(spiked, ref_period, cd) - dt, 0.0)
    out = spiked.astype(jnp.float32)

    spk_out[...] = out
    mem_out[...] = mem
    cd_out[...] = cd
    sum_out[...] = sum_out[...] + out


# --------------------------------------------------------------------------- #
# Batch-block choice (MXU M-row utilization vs. keeping work on both v7x TCs)
# --------------------------------------------------------------------------- #
def _pick_batch_block(N, hout, target_rows=128):
    """Largest divisor of N with B_img*Hout <= target_rows, preferring >= 2 blocks."""
    cap = max(1, target_rows // max(hout, 1))
    divs = [b for b in range(1, N + 1) if N % b == 0]
    fits = [b for b in divs if b <= cap] or [1]
    multi = [b for b in fits if N // b >= 2]
    return max(multi) if multi else max(fits)


# --------------------------------------------------------------------------- #
# Multi-step entry point (T simulation steps in one pallas_call)
# --------------------------------------------------------------------------- #
@partial(jax.jit, static_argnames=("hout", "batch_block"))
def spiking_conv2d_sim(scalars, x_im2row, w_toe, mem, cd, ssum, *, hout,
                       batch_block=None):
    """Run T spiking-conv steps.

    scalars  : (3,) f32                         [threshold, dt, ref_period]
    x_im2row : (T, N*Hout, KH*Wp*Cin) bf16      height-im2row'd, padded spikes
    w_toe    : (KH*Wp*Cin, Wout*Cout) bf16      Toeplitz conv weight
    mem/cd/ssum : (N*Hout, Wout*Cout) f32       recurrent neuron state (lane-dense)
    Returns (spikes[T, N*Hout, WC], mem, cd, ssum); state buffers are donated.
    Calling with T == 1 reproduces exactly one forward() of the torch module.
    """
    T, NH, Kdim = x_im2row.shape
    _, WC = w_toe.shape
    N = NH // hout
    if batch_block is None:
        batch_block = _pick_batch_block(N, hout)
    assert N % batch_block == 0, (N, batch_block)
    BH = batch_block * hout            # MXU M rows per grid step
    NB = N // batch_block              # batch blocks ("parallel" grid axis)

    state_bs = pl.BlockSpec((BH, WC), lambda b, t: (b, 0))          # resident over T
    x_bs = pl.BlockSpec((None, BH, Kdim), lambda b, t: (t, b, 0))   # new each step
    spk_bs = pl.BlockSpec((None, BH, WC), lambda b, t: (t, b, 0))   # new each step
    # TODO(synk): the constant-index weight block still gets 2 pipeline buffers;
    #             at 54 KB that is negligible, revisit for much larger weights.
    w_bs = pl.BlockSpec((Kdim, WC), lambda b, t: (0, 0))

    state_shape = jax.ShapeDtypeStruct((NH, WC), jnp.float32)
    spk_shape = jax.ShapeDtypeStruct((T, NH, WC), jnp.float32)

    return pl.pallas_call(
        _spiking_kernel,
        grid=(NB, T),
        in_specs=[
            pl.BlockSpec(memory_space=pltpu.MemorySpace.SMEM),  # scalars
            x_bs,                                               # im2row spikes
            w_bs,                                               # Toeplitz weight
            state_bs, state_bs, state_bs,                       # mem, cd, ssum (in)
        ],
        out_specs=(spk_bs, state_bs, state_bs, state_bs),
        out_shape=(spk_shape, state_shape, state_shape, state_shape),
        # Donate the recurrent-state buffers: mem/cd/ssum are updated in place.
        input_output_aliases={3: 1, 4: 2, 5: 3},
        compiler_params=pltpu.CompilerParams(
            dimension_semantics=("parallel", "arbitrary"),  # batch blocks || , T seq
            vmem_limit_bytes=32 * 1024 * 1024),             # safe on v5e/v6e/v7x
    )(scalars, x_im2row, w_toe, mem, cd, ssum)


# --------------------------------------------------------------------------- #
# Boundary / one-time layout helpers (NOT per-step state work)
# --------------------------------------------------------------------------- #
def build_toeplitz_weight(weight_oihw, width_out):
    """(Cout,Cin,KH,KW) conv weight -> (KH*Wp*Cin, Wout*Cout) bf16 Toeplitz matrix.

    Built once per weight, outside the time loop (stride=1 only):
      w_toe[kh*Wp*Cin + wp*Cin + ci, w*Cout + co] = W[co, ci, kh, wp-w]
                                                    if 0 <= wp-w < KW else 0
    """
    Cout, Cin, KH, KW = weight_oihw.shape
    Wp = width_out + KW - 1
    w_t = jnp.transpose(weight_oihw, (2, 3, 1, 0)).astype(jnp.float32)  # (KH,KW,Cin,Cout)
    wp = jnp.arange(Wp)[:, None]
    wo = jnp.arange(width_out)[None, :]
    kw_rel = wp - wo                                                # (Wp, Wout)
    valid = (kw_rel >= 0) & (kw_rel < KW)
    gathered = w_t[:, jnp.clip(kw_rel, 0, KW - 1), :, :]            # (KH,Wp,Wout,Cin,Cout)
    gathered = jnp.where(valid[None, :, :, None, None], gathered, 0.0)
    w_toe = jnp.transpose(gathered, (0, 1, 3, 2, 4))                # (KH,Wp,Cin,Wout,Cout)
    return w_toe.reshape(KH * Wp * Cin, width_out * Cout).astype(jnp.bfloat16)


def pack_inputs(spikes_tnchw, padding, KH):
    """(T,N,Cin,H,W) binary spikes -> (T, N*Hout, KH*Wp*Cin) bf16 height-im2row."""
    T, N, Cin, H, W = spikes_tnchw.shape
    Hp, Wp = H + 2 * padding, W + 2 * padding
    Hout = Hp - KH + 1
    x = jnp.transpose(spikes_tnchw, (0, 1, 3, 4, 2))                # (T,N,H,W,Cin)
    x = jnp.pad(x, ((0, 0), (0, 0), (padding, padding), (padding, padding), (0, 0)))
    x = x.reshape(T, N, Hp, Wp * Cin)
    rows = [x[:, :, kh:kh + Hout, :] for kh in range(KH)]           # kh-major order
    x = jnp.concatenate(rows, axis=-1)                              # (T,N,Hout,KH*Wp*Cin)
    return x.reshape(T, N * Hout, KH * Wp * Cin).astype(jnp.bfloat16)


def pack_state(a_nchw):
    """NCHW -> lane-dense (N*H, W*C) f32 (only used to initialize / import state)."""
    N, C, H, W = a_nchw.shape
    return jnp.transpose(a_nchw, (0, 2, 3, 1)).reshape(N * H, W * C).astype(jnp.float32)


def unpack_state(a_lane, channels, hout):
    """Lane-dense (N*Hout, Wout*C) -> NCHW (only used to export results)."""
    NH, WC = a_lane.shape
    N, Wout = NH // hout, WC // channels
    return jnp.transpose(a_lane.reshape(N, hout, Wout, channels), (0, 3, 1, 2))


# --------------------------------------------------------------------------- #
# Pure-JAX reference (PyTorch module semantics, NCHW)
# --------------------------------------------------------------------------- #
def _reference_step(spikes, weight_f32, mem, cd, ssum, threshold, dt, ref_period, padding):
    impulse = jax.lax.conv_general_dilated(
        spikes.astype(jnp.float32), weight_f32,
        window_strides=(1, 1),
        padding=((padding, padding), (padding, padding)),
        dimension_numbers=("NCHW", "OIHW", "NCHW"))
    impulse = jnp.where(cd > 0.0, 0.0, impulse)
    mem = mem + impulse
    spiked = mem >= threshold
    mem = jnp.where(spiked, 0.0, mem)
    cd = jnp.maximum(jnp.where(spiked, ref_period, cd) - dt, 0.0)
    out = spiked.astype(jnp.float32)
    return out, mem, cd, ssum + out


# --------------------------------------------------------------------------- #
# Demo / correctness check
# --------------------------------------------------------------------------- #
if __name__ == "__main__":
    N, Cin, H, W = 2, 4, 16, 16
    Cout, KH, KW = 8, 3, 3
    padding = 1
    threshold, dt, ref_period = 1.0, 0.001, 0.002   # nonzero ref_period exercises gating
    T = 4                                           # simulation time steps

    Hout = H + 2 * padding - KH + 1                 # stride = 1
    Wout = W + 2 * padding - KW + 1

    key = jax.random.PRNGKey(0)
    k_w, k_x = jax.random.split(key)
    fan_in = Cin * KH * KW
    bound = 1.0 / (fan_in ** 0.5)
    weight = jax.random.uniform(k_w, (Cout, Cin, KH, KW), jnp.float32,
                                minval=-bound, maxval=bound)

    # One-time setup (outside the time loop): Toeplitz weight + resident state.
    w_toe = build_toeplitz_weight(weight, Wout)     # (KH*Wp*Cin, Wout*Cout) bf16
    scalars = jnp.asarray([threshold, dt, ref_period], jnp.float32)
    mem = jnp.zeros((N * Hout, Wout * Cout), jnp.float32)
    cd = jnp.zeros_like(mem)
    ssum = jnp.zeros_like(mem)

    # All T time steps of input spikes, im2row'd once at the boundary.
    spikes_t = jax.random.bernoulli(k_x, p=0.5,
                                    shape=(T, N, Cin, H, W)).astype(jnp.float32)
    x_im2row = pack_inputs(spikes_t, padding, KH)   # (T, N*Hout, KH*Wp*Cin) bf16

    spk, mem, cd, ssum = spiking_conv2d_sim(scalars, x_im2row, w_toe, mem, cd, ssum,
                                            hout=Hout)
    jax.block_until_ready((spk, mem, cd, ssum))

    # Reference (NCHW). Uses bf16-rounded weights so both paths multiply
    # bit-identical values (spikes are exactly representable in bf16; kernel
    # accumulates in f32). Accumulation-order ulps could in principle flip a
    # membrane sitting exactly on the threshold; vanishingly unlikely here.
    w_ref = weight.astype(jnp.bfloat16).astype(jnp.float32)
    mem_r = jnp.zeros((N, Cout, Hout, Wout), jnp.float32)
    cd_r = jnp.zeros_like(mem_r)
    sum_r = jnp.zeros_like(mem_r)

    for t in range(T):
        spk_r, mem_r, cd_r, sum_r = _reference_step(
            spikes_t[t], w_ref, mem_r, cd_r, sum_r, threshold, dt, ref_period, padding)
        got_spk = unpack_state(spk[t], Cout, Hout)
        assert got_spk.shape == spk_r.shape, (got_spk.shape, spk_r.shape)
        assert jnp.allclose(got_spk, spk_r, atol=1e-3), f"spike mismatch at step {t}"

    for name, g, want in [("membrane", mem, mem_r),
                          ("cooldown", cd, cd_r),
                          ("sum_spikes", ssum, sum_r)]:
        got = unpack_state(g, Cout, Hout)
        assert got.shape == want.shape, (name, got.shape, want.shape)
        assert jnp.allclose(got, want, atol=1e-3), f"mismatch in {name}"

    print("KERNEL_OK")
</pallas_src>

<mosaic_0001>
module attributes {stable_mosaic.version = 11 : i64} {
  func.func @_spiking_kernel(%arg0: i32, %arg1: i32, %arg2: memref<3xf32, #tpu.memory_space<smem>>, %arg3: memref<1x16x216xbf16, #tpu.memory_space<vmem>>, %arg4: memref<216x128xbf16, #tpu.memory_space<vmem>>, %arg5: memref<16x128xf32, #tpu.memory_space<vmem>>, %arg6: memref<16x128xf32, #tpu.memory_space<vmem>>, %arg7: memref<16x128xf32, #tpu.memory_space<vmem>>, %arg8: memref<1x16x128xf32, #tpu.memory_space<vmem>>, %arg9: memref<16x128xf32, #tpu.memory_space<vmem>>, %arg10: memref<16x128xf32, #tpu.memory_space<vmem>>, %arg11: memref<16x128xf32, #tpu.memory_space<vmem>>) attributes {dimension_semantics = [#tpu.dimension_semantics<parallel>, #tpu.dimension_semantics<arbitrary>], iteration_bounds = array<i64: 2, 4>, scalar_prefetch = 0 : i64, scratch_operands = 0 : i64, tpu.core_type = #tpu.core_type<tc>, window_params = [{transform_indices = @transform_0, window_bounds = array<i64: 3>}, {transform_indices = @transform_1, window_bounds = array<i64: 1, 16, 216>}, {pipeline_mode = #tpu.pipeline_mode<synchronous>, transform_indices = @transform_2, window_bounds = array<i64: 216, 128>}, {transform_indices = @transform_3, window_bounds = array<i64: 16, 128>}, {transform_indices = @transform_4, window_bounds = array<i64: 16, 128>}, {transform_indices = @transform_5, window_bounds = array<i64: 16, 128>}, {transform_indices = @transform_6, window_bounds = array<i64: 1, 16, 128>}, {transform_indices = @transform_7, window_bounds = array<i64: 16, 128>}, {transform_indices = @transform_8, window_bounds = array<i64: 16, 128>}, {transform_indices = @transform_9, window_bounds = array<i64: 16, 128>}]} {
    %c0_i32 = arith.constant 0 : i32
    %0 = arith.cmpi eq, %arg1, %c0_i32 : i32
    %1 = arith.extui %0 : i1 to i32
    %c0_i32_0 = arith.constant 0 : i32
    %2 = arith.cmpi ne, %1, %c0_i32_0 : i32
    scf.if %2 {
      %c0_25 = arith.constant 0 : index
      %c0_26 = arith.constant 0 : index
      %37 = vector.load %arg5[%c0_25, %c0_26] : memref<16x128xf32, #tpu.memory_space<vmem>>, vector<16x128xf32>
      %c0_27 = arith.constant 0 : index
      %c0_28 = arith.constant 0 : index
      %38 = vector.load %arg9[%c0_27, %c0_28] : memref<16x128xf32, #tpu.memory_space<vmem>>, vector<16x128xf32>
      tpu.vector_store %arg9[%c0_27, %c0_28], %37 {strides = array<i32>} : memref<16x128xf32, #tpu.memory_space<vmem>>, vector<16x128xf32>,
      %c0_29 = arith.constant 0 : index
      %c0_30 = arith.constant 0 : index
      %39 = vector.load %arg6[%c0_29, %c0_30] : memref<16x128xf32, #tpu.memory_space<vmem>>, vector<16x128xf32>
      %c0_31 = arith.constant 0 : index
      %c0_32 = arith.constant 0 : index
      %40 = vector.load %arg10[%c0_31, %c0_32] : memref<16x128xf32, #tpu.memory_space<vmem>>, vector<16x128xf32>
      tpu.vector_store %arg10[%c0_31, %c0_32], %39 {strides = array<i32>} : memref<16x128xf32, #tpu.memory_space<vmem>>, vector<16x128xf32>,
      %c0_33 = arith.constant 0 : index
      %c0_34 = arith.constant 0 : index
      %41 = vector.load %arg7[%c0_33, %c0_34] : memref<16x128xf32, #tpu.memory_space<vmem>>, vector<16x128xf32>
      %c0_35 = arith.constant 0 : index
      %c0_36 = arith.constant 0 : index
      %42 = vector.load %arg11[%c0_35, %c0_36] : memref<16x128xf32, #tpu.memory_space<vmem>>, vector<16x128xf32>
      tpu.vector_store %arg11[%c0_35, %c0_36], %41 {strides = array<i32>} : memref<16x128xf32, #tpu.memory_space<vmem>>, vector<16x128xf32>,
    } else {
    }
    %c0 = arith.constant 0 : index
    %c0_1 = arith.constant 0 : index
    %c0_2 = arith.constant 0 : index
    %3 = vector.load %arg3[%c0, %c0_1, %c0_2] : memref<1x16x216xbf16, #tpu.memory_space<vmem>>, vector<1x16x216xbf16>
    %4 = vector.shape_cast %3 : vector<1x16x216xbf16> to vector<16x216xbf16>
    %c0_3 = arith.constant 0 : index
    %c0_4 = arith.constant 0 : index
    %5 = vector.load %arg4[%c0_3, %c0_4] : memref<216x128xbf16, #tpu.memory_space<vmem>>, vector<216x128xbf16>
    %cst = arith.constant dense<0.000000e+00> : vector<16x128xf32>
    %6 = tpu.matmul %4, %5, %cst {dimension_numbers = #tpu.dot_dimension_numbers<[1], [0], [0], [1], [0, 0, 1, 1], [], []>} : vector<16x216xbf16>, vector<216x128xbf16>, vector<16x128xf32> -> vector<16x128xf32>
    %c0_5 = arith.constant 0 : index
    %7 = memref.load %arg2[%c0_5] : memref<3xf32, #tpu.memory_space<smem>>
    %c1 = arith.constant 1 : index
    %8 = memref.load %arg2[%c1] : memref<3xf32, #tpu.memory_space<smem>>
    %c2 = arith.constant 2 : index
    %9 = memref.load %arg2[%c2] : memref<3xf32, #tpu.memory_space<smem>>
    %c0_6 = arith.constant 0 : index
    %c0_7 = arith.constant 0 : index
    %10 = vector.load %arg9[%c0_6, %c0_7] : memref<16x128xf32, #tpu.memory_space<vmem>>, vector<16x128xf32>
    %c0_8 = arith.constant 0 : index
    %c0_9 = arith.constant 0 : index
    %11 = vector.load %arg10[%c0_8, %c0_9] : memref<16x128xf32, #tpu.memory_space<vmem>>, vector<16x128xf32>
    %cst_10 = arith.constant 0.000000e+00 : f32
    %12 = vector.broadcast %cst_10 : f32 to vector<16x128xf32>
    %13 = arith.cmpf ogt, %11, %12 : vector<16x128xf32>
    %cst_11 = arith.constant 0.000000e+00 : f32
    %14 = vector.broadcast %cst_11 : f32 to vector<16x128xf32>
    %15 = arith.select %13, %14, %6 : vector<16x128xi1>, vector<16x128xf32>
    %16 = arith.addf %10, %15 : vector<16x128xf32>
    %17 = vector.broadcast %7 : f32 to vector<16x128xf32>
    %18 = arith.cmpf oge, %16, %17 : vector<16x128xf32>
    %cst_12 = arith.constant 0.000000e+00 : f32
    %19 = vector.broadcast %cst_12 : f32 to vector<16x128xf32>
    %20 = arith.select %18, %19, %16 : vector<16x128xi1>, vector<16x128xf32>
    %21 = vector.broadcast %9 : f32 to vector<16x128xf32>
    %22 = arith.select %18, %21, %11 : vector<16x128xi1>, vector<16x128xf32>
    %23 = vector.broadcast %8 : f32 to vector<16x128xf32>
    %24 = arith.subf %22, %23 : vector<16x128xf32>
    %cst_13 = arith.constant 0.000000e+00 : f32
    %25 = vector.broadcast %cst_13 : f32 to vector<16x128xf32>
    %26 = arith.maximumf %24, %25 : vector<16x128xf32>
    %27 = arith.extui %18 : vector<16x128xi1> to vector<16x128xi32>
    %28 = arith.sitofp %27 : vector<16x128xi32> to vector<16x128xf32>
    %c0_14 = arith.constant 0 : index
    %c0_15 = arith.constant 0 : index
    %c0_16 = arith.constant 0 : index
    %29 = vector.load %arg8[%c0_14, %c0_15, %c0_16] : memref<1x16x128xf32, #tpu.memory_space<vmem>>, vector<1x16x128xf32>
    %30 = vector.shape_cast %29 : vector<1x16x128xf32> to vector<16x128xf32>
    %31 = vector.shape_cast %28 : vector<16x128xf32> to vector<1x16x128xf32>
    tpu.vector_store %arg8[%c0_14, %c0_15, %c0_16], %31 {strides = array<i32>} : memref<1x16x128xf32, #tpu.memory_space<vmem>>, vector<1x16x128xf32>,
    %c0_17 = arith.constant 0 : index
    %c0_18 = arith.constant 0 : index
    %32 = vector.load %arg9[%c0_17, %c0_18] : memref<16x128xf32, #tpu.memory_space<vmem>>, vector<16x128xf32>
    tpu.vector_store %arg9[%c0_17, %c0_18], %20 {strides = array<i32>} : memref<16x128xf32, #tpu.memory_space<vmem>>, vector<16x128xf32>,
    %c0_19 = arith.constant 0 : index
    %c0_20 = arith.constant 0 : index
    %33 = vector.load %arg10[%c0_19, %c0_20] : memref<16x128xf32, #tpu.memory_space<vmem>>, vector<16x128xf32>
    tpu.vector_store %arg10[%c0_19, %c0_20], %26 {strides = array<i32>} : memref<16x128xf32, #tpu.memory_space<vmem>>, vector<16x128xf32>,
    %c0_21 = arith.constant 0 : index
    %c0_22 = arith.constant 0 : index
    %34 = vector.load %arg11[%c0_21, %c0_22] : memref<16x128xf32, #tpu.memory_space<vmem>>, vector<16x128xf32>
    %35 = arith.addf %34, %28 : vector<16x128xf32>
    %c0_23 = arith.constant 0 : index
    %c0_24 = arith.constant 0 : index
    %36 = vector.load %arg11[%c0_23, %c0_24] : memref<16x128xf32, #tpu.memory_space<vmem>>, vector<16x128xf32>
    tpu.vector_store %arg11[%c0_23, %c0_24], %35 {strides = array<i32>} : memref<16x128xf32, #tpu.memory_space<vmem>>, vector<16x128xf32>,
    return
  }
  func.func @transform_0(%arg0: i32, %arg1: i32) -> i32 {
    %c0_i32 = arith.constant 0 : i32
    %c0_i32_0 = arith.constant 0 : i32
    return %c0_i32 : i32
  }
  func.func @transform_1(%arg0: i32, %arg1: i32) -> (i32, i32, i32) {
    %c0_i32 = arith.constant 0 : i32
    %c0_i32_0 = arith.constant 0 : i32
    return %arg1, %arg0, %c0_i32 : i32, i32, i32
  }
  func.func @transform_2(%arg0: i32, %arg1: i32) -> (i32, i32) {
    %c0_i32 = arith.constant 0 : i32
    %c0_i32_0 = arith.constant 0 : i32
    %c0_i32_1 = arith.constant 0 : i32
    return %c0_i32, %c0_i32_0 : i32, i32
  }
  func.func @transform_3(%arg0: i32, %arg1: i32) -> (i32, i32) {
    %c0_i32 = arith.constant 0 : i32
    %c0_i32_0 = arith.constant 0 : i32
    return %arg0, %c0_i32 : i32, i32
  }
  func.func @transform_4(%arg0: i32, %arg1: i32) -> (i32, i32) {
    %c0_i32 = arith.constant 0 : i32
    %c0_i32_0 = arith.constant 0 : i32
    return %arg0, %c0_i32 : i32, i32
  }
  func.func @transform_5(%arg0: i32, %arg1: i32) -> (i32, i32) {
    %c0_i32 = arith.constant 0 : i32
    %c0_i32_0 = arith.constant 0 : i32
    return %arg0, %c0_i32 : i32, i32
  }
  func.func @transform_6(%arg0: i32, %arg1: i32) -> (i32, i32, i32) {
    %c0_i32 = arith.constant 0 : i32
    %c0_i32_0 = arith.constant 0 : i32
    return %arg1, %arg0, %c0_i32 : i32, i32, i32
  }
  func.func @transform_7(%arg0: i32, %arg1: i32) -> (i32, i32) {
    %c0_i32 = arith.constant 0 : i32
    %c0_i32_0 = arith.constant 0 : i32
    return %arg0, %c0_i32 : i32, i32
  }
  func.func @transform_8(%arg0: i32, %arg1: i32) -> (i32, i32) {
    %c0_i32 = arith.constant 0 : i32
    %c0_i32_0 = arith.constant 0 : i32
    return %arg0, %c0_i32 : i32, i32
  }
  func.func @transform_9(%arg0: i32, %arg1: i32) -> (i32, i32) {
    %c0_i32 = arith.constant 0 : i32
    %c0_i32_0 = arith.constant 0 : i32
    return %arg0, %c0_i32 : i32, i32
  }
}

</mosaic_0001>

<bundles_post_ra>
// kernel: spiking_conv2d_sim.1
= control target key start
LH: loop header
LB: loop body
LE: loop exit
PB: predicated region body
PF: predicated region fallthrough
CT: control target
= control target key end

     0   :  { %s2323_s0 = inlined_call_operand.vmem [shape: f32[3], index: 0, kind: input, shape index: {}]   ;;  %s2324_s1 = inlined_call_operand.hbm [shape: bf16[4,32,216], index: 1, kind: input, shape index: {}]   ;;  %s2325_s2 = inlined_call_operand.hbm [shape: bf16[216,128], index: 2, kind: input, shape index: {}]   ;;  %s2326_s3 = inlined_call_operand.hbm [shape: f32[32,128], index: 3, kind: input, shape index: {}, may-alias: {3,7}]   ;;  %s2327_s4 = inlined_call_operand.hbm [shape: f32[32,128], index: 4, kind: input, shape index: {}, may-alias: {4,8}]   ;;  %s2328_s5 = inlined_call_operand.hbm [shape: f32[32,128], index: 5, kind: input, shape index: {}, may-alias: {5,9}]   ;;  %s2329_s6 = inlined_call_operand.hbm [shape: f32[4,32,128], index: 6, kind: output, shape index: {0}]   ;;  %s2330_s7 = inlined_call_operand.hbm [shape: f32[32,128], index: 7, kind: output, shape index: {1}, may-alias: {3,7}]   ;;  %s2331_s8 = inlined_call_operand.hbm [shape: f32[32,128], index: 8, kind: output, shape index: {2}, may-alias: {4,8}]   ;;  %s2332_s9 = inlined_call_operand.hbm [shape: f32[32,128], index: 9, kind: output, shape index: {3}, may-alias: {5,9}]  }
   0x1   :  { %2356 = sst [smem:[#allocation38_spill]] %s2323_s0 }
   0x2   :  { %2357 = sst [smem:[#allocation39_spill]] %s2324_s1 }
   0x3   :  { %2358 = sst [smem:[#allocation40_spill]] %s2325_s2 }
   0x4   :  { %2359 = sst [smem:[#allocation41_spill]] %s2326_s3 }
   0x5   :  { %2360 = sst [smem:[#allocation42_spill]] %s2327_s4 }
   0x6   :  { %2361 = sst [smem:[#allocation43_spill]] %s2329_s6 }
   0x7   :  { %2362 = sst [smem:[#allocation44_spill]] %s2330_s7 }
   0x8   :  { %2363 = sst [smem:[#allocation45_spill]] %s2331_s8 }
   0x9   :  { %2364 = sst [smem:[#allocation46_spill]] %s2332_s9 }
   0xa   :  { %15 = vsyncpa [#allocation5], 0 }
   0xb   :  { %16 = vsyncpa [#allocation3], 0 }
   0xc   :  { %18 = vsyncpa [#allocation3 + $0x1], 0 }
   0xd   :  { %19 = vsyncpa [#allocation8], 0 }
   0xe   :  { %20 = vsyncpa [#allocation4], 0 }
   0xf   :  { %22 = vsyncpa [#allocation4 + $0x1], 0 }
  0x10   :  { %23 = vsyncpa [#allocation14], 0 }
  0x11   :  { %25 = vsyncpa [#allocation14 + $0x1], 0 }
  0x12   :  { %26 = vsyncpa [#allocation17], 0 }
  0x13   :  { %28 = vsyncpa [#allocation17 + $0x1], 0  ;;  %s1868_s30 = smov 0   ;;  %s1870_s10 = smov 0  }
  0x14   :  { %s1872_s11 = smov 0   ;;  %s1874_s12 = smov 0  }
  0x15   :  { %s1876_s13 = smov 0   ;;  %s1878_s14 = smov 0  }
  0x16   :  { %s1880_s15 = smov 0   ;;  %s1882_s16 = smov 0  }
  0x17   :  { %s1884_s17 = smov 0   ;;  %s1886_s18 = smov 0  }
  0x18   :  { %s1888_s19 = smov 0  }
  0x19 LB: > { %2365 = sst [smem:[#allocation25_spill]] %s1767_s30  ;;  %s43_s20 = sadd.s32 1, %s1799_s17  ;;  %s1807_s19 = sphi %s1888_s19, %s34_s19   ;;  %s1803_s18 = sphi %s1886_s18, %s2423_s18   ;;  %s1799_s17 = sphi %s1884_s17, %s2422_s17   ;;  %s1795_s16 = sphi %s1882_s16, %s2421_s16   ;;  %s1791_s15 = sphi %s1880_s15, %s2420_s15   ;;  %s1787_s14 = sphi %s1878_s14, %s2419_s14   ;;  %s1783_s13 = sphi %s1876_s13, %s2427_s13   ;;  %s1779_s12 = sphi %s1874_s12, %s2426_s12   ;;  %s1775_s11 = sphi %s1872_s11, %s2417_s11   ;;  %s1771_s10 = sphi %s1870_s10, %s2425_s10   ;;  %s1767_s30 = sphi %s1868_s30, %s2424_s30  }
  0x1a   : > { %2366 = sst [smem:[#allocation26_spill]] %s1775_s11  ;;  %s46_s21 = sadd.s32 1, %s1803_s18 }
  0x1b   : > { %2367 = sst [smem:[#allocation27_spill]] %s1787_s14  ;;  %p44_p0 = scmp.ge.s32.totalorder %s43_s20, 4 }
  0x1c   : > { %2368 = sst [smem:[#allocation28_spill]] %s1795_s16  ;;  %s76_s22 = sadd.s32 1, %s1787_s14 }
  0x1d   : > { %2369 = sst [smem:[#allocation29_spill]] %s1799_s17  ;;  %p83_p1 = scmp.ne.s32.totalorder %s1787_s14, %s1783_s13 }
  0x1e   : > { %2370 = sst [smem:[#allocation30_spill]] %s1803_s18  ;;  %p84_p2 = scmp.eq.s32.totalorder %s1807_s19, 0 }
  0x1f   : > { %s2429_s20 = smov (%p44_p0, %s43_s20), 0  ;;  %s2431_s21 = smov (!%p44_p0, %s46_s21), %s1803_s18 }
  0x20   : > { %2371 = sst [smem:[#allocation31_spill]] %s2429_s20  ;;  %s71_s23 = ssub.s32 %s1799_s17, %s2429_s20 }
  0x21   : > { %p1939_p3 = por %p84_p2, %p83_p1  ;;  %p48_p4 = scmp.ge.s32.totalorder %s2431_s21, 2 }
  0x22   : > { %p1315_p5 = scmp.lt.s32.totalorder %s1807_s19, 8  ;;  %s342_s25 = sand.u32 1, %s1807_s19  }
  0x23   : > { %s2433_s21 = smov (%p48_p4, %s2431_s21), 0  ;;  %s344_s26 = sand.u32 1, %s1787_s14  }
  0x24   : > { %2373 = sst [smem:[#allocation32_spill]] %s2433_s21  ;;  %s72_s27 = ssub.s32 %s1803_s18, %s2433_s21 }
  0x25   : > { %s1128_s28 = sshll.u32 %s344_s26, 4  ;;  %s73_s29 = sor.u32 %s72_s27, %s71_s23 }
  0x26   : > { %p121_p6 = scmp.eq.s32.totalorder %s72_s27, 0  ;;  %p74_p7 = scmp.eq.s32.totalorder %s73_s29, 0 }
  0x27   : > { %s1234_s20 = sshll.u32 %s1803_s18, 2  ;;  %s1131_s9 = sshll.u32 %s1799_s17, 3 }
  0x28   : > { %s1953_s8 = scalar_select %p74_p7, %s1787_s14, %s76_s22  }
  0x29   : > { %s352_s6 = sadd.s32 %s1234_s20, %s1131_s9  ;;  %s346_s7 = scalar_lea.vmem [#allocation6], %s1128_s28 }
  0x2a   : > { %2374 = sst [smem:[#allocation33_spill]] %s1953_s8  ;;  %s357_s16 = sshll.u32 %s346_s7, 4  ;;  %s358_s16 = int_to_ptr.vmem [resolvable:$true] %s357_s16 }
  0x2b   : > { %s1132_s26 = sshll.u32 %s352_s6, 2  ;;  %s2375_s1 = sld [smem:[#allocation39_spill]] }
  0x2c   : > { %p1288_p8 = pnand %p1315_p5, %p1939_p3  ;;  %s1962_s17 = scalar_lea.sflag [#allocation3], %s342_s25 }
  0x2d   : > { %s2344_s9 = smov 128   ;;  %s2345_s20 = smov 8  }
  0x2e   : > { %s1969_s6 = sshll.u32 %s1803_s18, 4  ;;  %s123_s7 = sadd.s32 1, %s1775_s11 }
  0x2f   : > { %p130_p9 = scmp.ne.s32.totalorder %s1775_s11, %s1771_s10  ;;  %s369_s24 = sand.u32 1, %s1775_s11  }
  0x30   : > { %s1984_s25 = sshll.u32 %s369_s24, 4  ;;  %s2377_s3 = sld [smem:[#allocation41_spill]] }
  0x31   : > { %s354_s21 = scalar_lea.hbm %s2375_s1, %s1132_s26  ;;  %p132_p10 = por %p130_p9, %p84_p2 }
  0x32   : > { %s355_s22 = sshll.u32 %s354_s21, 4  ;;  %s371_s27 = scalar_lea.vmem [#allocation9], %s1984_s25  ;;  %s356_s22 = int_to_ptr.hbm [resolvable:$true] %s355_s22 }
  0x33   : > { %1290 = dma.hbm_to_vmem [thread:$0]  (!%p1288_p8), %s356_s22, 256, %s358_s16, %s1962_s17, %s2344_s9, %s2344_s9, %s2345_s20  }
  0x34   : > { %s1976_s21 = scalar_select %p121_p6, %s1775_s11, %s123_s7  }
  0x35   : > { %s379_s29 = sshll.u32 %s371_s27, 4  ;;  %p1993_p11 = pnand %p1315_p5, %p132_p10  ;;  %s380_s29 = int_to_ptr.vmem [resolvable:$true] %s379_s29 }
  0x36   : > { %2376 = sst [smem:[#allocation34_spill]] %s1976_s21  ;;  %s376_s16 = scalar_lea.hbm %s2377_s3, %s1969_s6 }
  0x37   : > { %s377_s23 = sshll.u32 %s376_s16, 4  ;;  %s2379_s4 = sld [smem:[#allocation42_spill]]  ;;  %s378_s23 = int_to_ptr.hbm [resolvable:$true] %s377_s23 }
  0x38   : > { %1293 = dma.hbm_to_vmem [thread:$0]  (!%p1993_p11), %s378_s23, 256, %s380_s29, %s1962_s17, %s2344_s9, %s2344_s9, %s2345_s20  }
  0x39   : > { %s393_s16 = scalar_lea.vmem [#allocation10], %s1984_s25  ;;  %s2015_s7 = sadd.s32 4294967295, %s1807_s19  }
  0x3a   : > { %s401_s27 = sshll.u32 %s393_s16, 4  ;;  %s2343_s23 = sadd.s32 4294967294, %s1807_s19   ;;  %s402_s27 = int_to_ptr.vmem [resolvable:$true] %s401_s27 }
  0x3b   : > { %p89_p12 = scmp.ne.s32.totalorder %s1783_s13, %s1779_s12  ;;  %p2341_p13 = scmp.eq.s32.totalorder %s2015_s7, 0 }
  0x3c   : > { %p136_p0 = scmp.ne.s32.totalorder %s1771_s10, %s1767_s30  ;;  %p214_p2 = scmp.eq.s32.totalorder %s2015_s7, 7 }
  0x3d   : > { %s398_s28 = scalar_lea.hbm %s2379_s4, %s1969_s6  ;;  %p220_p3 = scmp.eq.s32.totalorder %s2343_s23, 7 }
  0x3e   : > { %s399_s26 = sshll.u32 %s398_s28, 4  ;;  %p2028_p4 = por %p2341_p13, %p89_p12  ;;  %s400_s26 = int_to_ptr.hbm [resolvable:$true] %s399_s26 }
  0x3f   : > { %1296 = dma.hbm_to_vmem [thread:$0]  (!%p1993_p11), %s400_s26, 256, %s402_s27, %s1962_s17, %s2344_s9, %s2344_s9, %s2345_s20  }
  0x40   : > { %p2034_p5 = por %p136_p0, %p2341_p13  ;;  %p2041_p6 = por %p214_p2, %p83_p1 }
  0x41   : > { %p2045_p7 = por %p220_p3, %p89_p12  ;;  %p2052_p8 = por %p214_p2, %p130_p9 }
  0x42   : > { %s2381_s24 = scalar_select %p2034_p5, 1, 0 }
  0x43   : > { %s2383_s26 = scalar_select %p2045_p7, 1, 0 }
  0x44   : > { %p2056_p10 = por %p220_p3, %p136_p0  ;;  %p1124_p13 = scmp.ge.s32.totalorder %s1807_s19, 1 }
  0x45   : > { %2384 = sst [smem:[#allocation35_spill]] %s2383_s26  ;;  %p305_p5 = scmp.lt.s32.totalorder %s1807_s19, 9 }
  0x46   : > { %s2386_s27 = scalar_select %p2056_p10, 1, 0 }
  0x47   : > { %s2388_s0 = sld [smem:[#allocation38_spill]]  ;;  %p2065_p1 = pnand %p1124_p13, %p305_p5 }
  0x48   : > { %2387 = sst [smem:[#allocation36_spill]] %s2386_s27  ;;  %p2391_p12 = scmp.eq.s32.totalorder %s2015_s7, 0 }
  0x49   : > { %s2390_s2 = sld [smem:[#allocation40_spill]]  ;;  %p1280_p9 = pneg %p2065_p1 }
  0x4a   : > { %s1811_s9 = smov [#allocation7]   ;;  %s1813_s8 = smov 64  }
  0x4b   : > { %p1281_p0 = pnand %p1280_p9, %p2391_p12  ;;  %s328_s23 = sshll.u32 %s1811_s9, 4  ;;  %s329_s23 = int_to_ptr.vmem [resolvable:$true] %s328_s23 }
  0x4c   : > { %s1814_s14 = smov 4   ;;  %s420_s3 = scalar_lea.hbm %s2328_s5, %s1969_s6 }
  0x4d   : > { %s317_s20 = sshll.u32 %s2388_s0, 4  ;;  %s1812_s0 = smov [#allocation2]   ;;  %s318_s20 = int_to_ptr.vmem [resolvable:$true] %s317_s20 }
  0x4e   : > { %1283 = dma.vmem_to_smem (!%p1281_p0), %s318_s20, 16, %s1812_s0, [#allocation5]  }
  0x4f   : > { %s326_s18 = sshll.u32 %s2390_s2, 4  ;;  %s415_s4 = scalar_lea.vmem [#allocation11], %s1984_s25  ;;  %s327_s18 = int_to_ptr.hbm [resolvable:$true] %s326_s18 }
  0x50   : > { %1286 = dma.hbm_to_vmem [thread:$0]  (!%p1281_p0), %s327_s18, 1728, %s329_s23, [#allocation8], %s1813_s8, %s1813_s8, %s1814_s14  }
  0x51   : > { %s423_s2 = sshll.u32 %s415_s4, 4  ;;  %s421_s30 = sshll.u32 %s420_s3, 4  ;;  %s424_s2 = int_to_ptr.vmem [resolvable:$true] %s423_s2  ;;  %s422_s30 = int_to_ptr.hbm [resolvable:$true] %s421_s30 }
  0x52   : > { %s2392_s27 = smov 8   ;;  %s2393_s26 = smov 128  }
  0x53   : > { %1299 = dma.hbm_to_vmem [thread:$0]  (!%p1993_p11), %s422_s30, 256, %s424_s2, %s1962_s17, %s2393_s26, %s2393_s26, %s2392_s27  }
  0x54   : > { %435 = sbr.rel (%p2065_p1) target bundleno = 348 (0x15c), region = 44 }
  0x59   : > { %p2394_p13 = scmp.eq.s32.totalorder %s2015_s7, 0 }
  0x5b   : > { %1738 = dma.done.wait (%p2394_p13), [#allocation5], 16   ;;  %p2395_p2 = pmov %p2394_p13 }
  0x5c   : > { %s442_s0 = sand.u32 1, %s2015_s7   ;;  %s2353_s8 = sand.u32 1, %s1783_s13  }
  0x5d   : > { %1740 = vsyncadd (%p2395_p2), [#allocation5], 4294967280  ;;  %s1144_s11 = sshll.u32 %s2353_s8, 4  ;;  %s443_s2 = scalar_lea.sflag [#allocation3], %s442_s0 }
  0x5e   : > { %s2099_s30 = scalar_lea.vmem [#allocation6], %s1144_s11 }
  0x5f   : > { %1742 = dma.done.wait (%p2028_p4), %s443_s2, 256  }
  0x60   : > { %1744 = vsyncadd (%p2028_p4), %s443_s2, 4294967040  ;;  %p2396_p11 = pmov %p2395_p2 }
  0x61   : > { %p2397_p3 = pmov %p2395_p2 }
  0x62   : > { %1746 = dma.done.wait (%p2396_p11), [#allocation8], 1728  }
  0x63   : > { %1748 = vsyncadd (%p2397_p3), [#allocation8], 4294965568  ;;  %s2352_s1 = sand.u32 1, %s1771_s10   ;;  %p2398_p5 = scmp.ne.s32.totalorder %s2381_s24, 0 }
  0x64   : > { %s1146_s14 = sshll.u32 %s2352_s1, 4 }
  0x65   : > { %s461_s17 = scalar_lea.vmem [#allocation9], %s1146_s14 }
  0x66   : > { %1750 = dma.done.wait (%p2398_p5), %s443_s2, 768  }
  0x67   : > { %1752 = vsyncadd (%p2398_p5), %s443_s2, 4294966528  ;;  %s471_s18 = scalar_lea.vmem [#allocation10], %s1146_s14  ;;  %s481_s20 = scalar_lea.vmem [#allocation11], %s1146_s14 }
  0x68   : > { %487 = sfence }
  0x69   : > { %s2116_s6 = scalar_lea.vmem [#allocation12], %s1144_s11  ;;  %s2118_s21 = scalar_lea.vmem [#allocation13], %s1146_s14 }
  0x6a   : > { %s2120_s25 = scalar_lea.vmem [#allocation15], %s1146_s14  ;;  %s2122_s22 = scalar_lea.vmem [#allocation16], %s1146_s14 }
  0x6b   : > { %p1153_p4 = scmp.ne.s32.totalorder %s1791_s15, 0 }
  0x6d   : > { %560 = sbr.rel (%p1153_p4) target bundleno = 121 (0x79), region = 72 }
  0x72   : > { %v561_v0 = vld [vmem:[%s461_s17] sm:$0xff]  ;;  %v562_v1 = vld [vmem:[%s461_s17 + $0x8] sm:$0xff] }
  0x73   : > { %v565_v2 = vld [vmem:[%s471_s18] sm:$0xff]  ;;  %563 = vst [vmem:[%s2118_s21] sm:$0xff] %v561_v0  ;;  %v566_v3 = vld [vmem:[%s471_s18 + $0x8] sm:$0xff] }
  0x74   : > { %564 = vst [vmem:[%s2118_s21 + $0x8] sm:$0xff] %v562_v1  ;;  %v569_v4 = vld [vmem:[%s481_s20] sm:$0xff]  ;;  %v570_v5 = vld [vmem:[%s481_s20 + $0x8] sm:$0xff] }
  0x75   : > { %567 = vst [vmem:[%s2120_s25] sm:$0xff] %v565_v2 }
  0x76   : > { %568 = vst [vmem:[%s2120_s25 + $0x8] sm:$0xff] %v566_v3 }
  0x77   : > { %571 = vst [vmem:[%s2122_s22] sm:$0xff] %v569_v4 }
  0x78   : > { %572 = vst [vmem:[%s2122_s22 + $0x8] sm:$0xff] %v570_v5 }
  0x79 PF: > { %v1247_v6 = vld [vmem:[#allocation7 + $0x38] sm:$0xff]  ;;  %v601_v7 = vld [vmem:[#allocation7 + $0x68] sm:$0xf]  ;;  %vm696_vm0 = vcmask 1043456   ;;  %v1246_v9 = vld [vmem:[#allocation7 + $0x30] sm:$0xff]  ;;  %vm692_vm1 = vcmask 719872  }
  0x7a   : > { %v664_v8 = vunpack.c.l.b16 %v601_v7  ;;  %700 = vmatpush.bf16.msra.mxu0 %v1247_v6  ;;  %v1252_v12 = vld [vmem:[#allocation7 + $0x60] sm:$0xff]  ;;  %v1245_v13 = vld [vmem:[#allocation7 + $0x28] sm:$0xff]  ;;  %v1251_v14 = vld [vmem:[#allocation7 + $0x58] sm:$0xff]  ;;  %s2399_s29 = sld [smem:[#allocation28_spill]]  ;;  %s1224_s23 = sshll.u32 %s1791_s15, 2  ;;  %v1815_v43 = vmov 0.0  }
  0x7b   : > { %v1244_v15 = vld [vmem:[#allocation7 + $0x20] sm:$0xff]  ;;  %v1250_v16 = vld [vmem:[#allocation7 + $0x50] sm:$0xff]  ;;  %v1243_v17 = vld [vmem:[#allocation7 + $0x18] sm:$0xff]  ;;  %s2135_s24 = sld [smem:[#allocation2]]  ;;  %s817_s17 = sshll.u32 %s2118_s21, 4  ;;  %s2167_s17 = int_to_ptr.vmem [resolvable:$true] %s817_s17 }
  0x7c   : > { %v678_v10 = vpack.c.b16 %v664_v8, %v664_v8  ;;  %v1249_v18 = vld [vmem:[#allocation7 + $0x48] sm:$0xff]  ;;  %v1242_v19 = vld [vmem:[#allocation7 + $0x10] sm:$0xff]  ;;  %v1248_v20 = vld [vmem:[#allocation7 + $0x40] sm:$0xff]  ;;  %s2137_s26 = sld [smem:[#allocation2 + $0x2]]  ;;  %s834_s1 = sshll.u32 %s2120_s25, 4  ;;  %s2189_s1 = int_to_ptr.vmem [resolvable:$true] %s834_s1 }
  0x7d   : > { %v1241_v21 = vld [vmem:[#allocation7 + $0x8] sm:$0xff]  ;;  %v1238_v22 = vld [vmem:[%s2099_s30 + $0x4] sm:$0xf]  ;;  %v1156_v26 = vld [vmem:[%s2099_s30] sm:$0xf]  ;;  %s2139_s27 = sld [smem:[#allocation2 + $0x1]] }
  0x7e   : > { %v698_v11 = vsel %vm696_vm0, %v678_v10, 0  ;;  %701 = vmatpush.bf16.msra.mxu0 %v1246_v9  ;;  %v1158_v23 = vld [vmem:[%s2099_s30 + $0x8] sm:$0xf0]  ;;  %v1240_v25 = vld [vmem:[#allocation7] sm:$0xff]  ;;  %v1239_v27 = vld [vmem:[%s2099_s30 + $0x4] sm:$0xf0] }
  0x7f   : > { %716 = vmatpush.bf16.msra.mxu1 %v698_v11  ;;  %v1161_v24 = vor.u32 %v1238_v22, %v1158_v23  ;;  %v1157_v28 = vor.u32 %v1239_v27, %v1156_v26  ;;  %v733_v29 = vld [vmem:[%s2120_s25] sm:$0xff]  ;;  %v734_v40 = vld [vmem:[%s2120_s25 + $0x8] sm:$0xff]  ;;  %s2400_s30 = sld [smem:[#allocation44_spill]] }
  0x80   : > { %vm735_vm2 = vcmp.gt.f32.partialorder %v733_v29, 0.0  ;;  %v731_v33 = vld [vmem:[%s2118_s21] sm:$0xff]  ;;  %s1223_s9 = sshll.u32 %s2399_s29, 1  ;;  %s2146_s3 = sshll.u32 %s2399_s29, 4  ;;  %vm736_vm4 = vcmp.gt.f32.partialorder %v734_v40, 0.0  ;;  %v732_v50 = vld [vmem:[%s2118_s21 + $0x8] sm:$0xff] }
  0x81   : > { %v741_v35 = vstv %s2135_s24  ;;  %s797_s4 = sadd.s32 %s1224_s23, %s1223_s9  ;;  %v764_v39 = vld [vmem:[%s2122_s22] sm:$0xff]  ;;  %s800_s9 = sshll.u32 %s2116_s6, 4  ;;  %v765_v54 = vld [vmem:[%s2122_s22 + $0x8] sm:$0xff]  ;;  %s2182_s9 = int_to_ptr.vmem [resolvable:$true] %s800_s9 }
  0x82   : > { %702 = vmatpush.bf16.msra.mxu0 %v1245_v13  ;;  %v746_v37 = vstv %s2137_s26  ;;  %s1225_s15 = sshll.u32 %s797_s4, 3  ;;  %s2402_s26 = sld [smem:[#allocation43_spill]] }
  0x83   : > { %717 = vmatpush.bf16.msra.mxu1 %v1252_v12  ;;  %v749_v38 = vstv %s2139_s27  ;;  %s2403_s11 = sld [smem:[#allocation45_spill]]  ;;  %s2199_s4 = scalar_lea.sflag [#allocation14], %s442_s0 }
  0x84   : > { %s2405_s24 = sld [smem:[#allocation46_spill]] }
  0x85   : > { %s2401_s20 = smov %s2400_s30  ;;  %s816_s14 = scalar_lea.hbm %s2400_s30, %s2146_s3 }
  0x86   : > { %703 = vmatpush.bf16.msra.mxu0 %v1244_v15  ;;  %s2159_s18 = sshll.u32 %s816_s14, 4  ;;  %s820_s18 = int_to_ptr.hbm [resolvable:$true] %s2159_s18 }
  0x87   : > { %718 = vmatpush.bf16.msra.mxu1 %v1251_v14 }
  0x88   : > { %s799_s27 = scalar_lea.hbm %s2402_s26, %s1225_s15 }
  0x89   : > { %s2404_s2 = smov %s2403_s11  ;;  %s833_s30 = scalar_lea.hbm %s2403_s11, %s2146_s3 }
  0x8a   : > { %704 = vmatpush.bf16.msra.mxu0 %v1243_v17  ;;  %s802_s14 = sshll.u32 %s799_s27, 4  ;;  %s850_s8 = scalar_lea.hbm %s2405_s24, %s2146_s3  ;;  %s2187_s14 = int_to_ptr.hbm [resolvable:$true] %s802_s14 }
  0x8b   : > { %719 = vmatpush.bf16.msra.mxu1 %v1250_v16  ;;  %s2184_s23 = sshll.u32 %s833_s30, 4  ;;  %s851_s3 = sshll.u32 %s2122_s22, 4  ;;  %s2221_s3 = int_to_ptr.vmem [resolvable:$true] %s851_s3 }
  0x8c   : > { %2406 = sst [smem:[#allocation37_spill]] %s2184_s23  ;;  %s2193_s27 = sshll.u32 %s850_s8, 4  ;;  %s854_s27 = int_to_ptr.hbm [resolvable:$true] %s2193_s27 }
  0x8d   : > { %s1595_s11 = sshra.s32 %s820_s18, 4  ;;  %s1596_s11 = int_to_ptr.hbm [resolvable:$true] %s1595_s11 }
  0x8e   : > { %705 = vmatpush.bf16.msra.mxu0 %v1242_v19  ;;  %s1597_s30 = scalar_lea.hbm %s1596_s11, 16  ;;  %p1602_p0 = scmp.lt.s32.totalorder %s1596_s11, %s2401_s20 }
  0x8f   : > { %720 = vmatpush.bf16.msra.mxu1 %v1249_v18  ;;  %p1598_p1 = scmp.ne.s32.totalorder %s1596_s11, %s1597_s30 }
  0x91   : > { %p1599_p9 = pnand %p1598_p1, %p2052_p8 }
  0x92   : > { %706 = vmatpush.bf16.msra.mxu0 %v1241_v21 }
  0x93   : > { %721 = vmatpush.bf16.msra.mxu1 %v1248_v20  ;;  %p1600_p12 = pneg %p1599_p9 }
  0x96   : > { %1214 = vmatmul.msk.bf16.vlgmr.msra.gmra.mxu1 %vm692_vm1, %v1161_v24  ;;  %707 = vmatpush.bf16.msra.mxu0 %v1240_v25 }
  0x99   : > { %708 = vmatmul.bf16.vlgmr.msra.gmra.mxu0 %v1157_v28 }
 0x113   : > { %v723_v30 = vpop.f32.mrf.mxu1 }
 0x116   : > { %v709_v31 = vpop.f32.mrf.mxu0 }
 0x117   : > { %v724_v32 = vadd.f32 %v723_v30, %v709_v31 }
 0x119   : > { %v737_v34 = vsel %vm735_vm2, 0.0, %v724_v32 }
 0x11a   : > { %v739_v36 = vadd.f32 %v737_v34, %v731_v33 }
 0x11b   : > { %v725_v47 = vpop.f32.mrf.mxu1 }
 0x11c   : > { %vm742_vm3 = vcmp.ge.f32.partialorder %v739_v36, %v741_v35 }
 0x11d   : > { %v744_v41 = vsel %vm742_vm3, 0.0, %v739_v36  ;;  %v747_v42 = vsel %vm742_vm3, %v746_v37, %v733_v29  ;;  %v1217_v44 = vsel %vm742_vm3, 1.0, %v1815_v43 }
 0x11e   : > { %v750_v45 = vsub.f32 %v747_v42, %v749_v38  ;;  %758 = vst [vmem:[%s2116_s6] sm:$0xff] %v1217_v44  ;;  %v766_v46 = vadd.f32 %v1217_v44, %v764_v39  ;;  %v711_v48 = vpop.f32.mrf.mxu0 }
 0x11f   : > { %760 = vst [vmem:[%s2118_s21] sm:$0xff] %v744_v41  ;;  %v726_v49 = vadd.f32 %v725_v47, %v711_v48 }
 0x120   : > { %v752_v51 = vmax.f32 %v750_v45, 0.0  ;;  %768 = vst [vmem:[%s2122_s22] sm:$0xff] %v766_v46 }
 0x121   : > { %v738_v52 = vsel %vm736_vm4, 0.0, %v726_v49 }
 0x122   : > { %762 = vst [vmem:[%s2120_s25] sm:$0xff] %v752_v51  ;;  %v740_v53 = vadd.f32 %v738_v52, %v732_v50 }
 0x124   : > { %vm743_vm5 = vcmp.ge.f32.partialorder %v740_v53, %v741_v35 }
 0x125   : > { %v745_v55 = vsel %vm743_vm5, 0.0, %v740_v53  ;;  %v748_v56 = vsel %vm743_vm5, %v746_v37, %v734_v40  ;;  %v1218_v57 = vsel %vm743_vm5, 1.0, %v1815_v43 }
 0x126   : > { %v751_v58 = vsub.f32 %v748_v56, %v749_v38  ;;  %759 = vst [vmem:[%s2116_s6 + $0x8] sm:$0xff] %v1218_v57  ;;  %v767_v59 = vadd.f32 %v1218_v57, %v765_v54 }
 0x127   : > { %761 = vst [vmem:[%s2118_s21 + $0x8] sm:$0xff] %v745_v55  ;;  %s1601_s21 = scalar_lea.hbm %s2401_s20, 32 }
 0x128   : > { %v753_v60 = vmax.f32 %v751_v58, 0.0  ;;  %769 = vst [vmem:[%s2122_s22 + $0x8] sm:$0xff] %v767_v59  ;;  %p1603_p13 = scmp.lt.s32.totalorder %s1601_s21, %s1597_s30 }
 0x12a   : > { %p1604_p2 = por %p1603_p13, %p1602_p0 }
 0x12c   : > { %p1605_p11 = pnand %p1604_p2, %p1600_p12 }
 0x12e   : > { %1608 = shalt.err (!%p1605_p11)
}
 0x12f   : > { %s1816_s7 = smov 128   ;;  %s1817_s0 = smov 8   ;;  %763 = vst [vmem:[%s2120_s25 + $0x8] sm:$0xff] %v753_v60 }
 0x130   : > { %1273 = dma.vmem_to_hbm [thread:$0]  (%p2052_p8), %s2167_s17, 256, %s820_s18, %s2199_s4, %s1816_s7, %s1816_s7, %s1817_s0  }
 0x131   : > { %s2407_s22 = sand.u32 1, %s1783_s13   ;;  %s1623_s30 = sshra.s32 %s2187_s14, 4  ;;  %s1624_s30 = int_to_ptr.hbm [resolvable:$true] %s1623_s30 }
 0x132   : > { %s771_s11 = scalar_lea.sflag [#allocation4], %s2407_s22  ;;  %s1625_s6 = scalar_lea.hbm %s1624_s30, 16 }
 0x133   : > { %p1626_p3 = scmp.ne.s32.totalorder %s1624_s30, %s1625_s6  ;;  %s1629_s8 = scalar_lea.hbm %s2402_s26, 128 }
 0x134   : > { %p1630_p1 = scmp.lt.s32.totalorder %s1624_s30, %s2402_s26  ;;  %p1631_p9 = scmp.lt.s32.totalorder %s1629_s8, %s1625_s6 }
 0x135   : > { %p1627_p5 = pnand %p1626_p3, %p2041_p6 }
 0x136   : > { %p1632_p12 = por %p1631_p9, %p1630_p1 }
 0x137   : > { %p1628_p4 = pneg %p1627_p5 }
 0x139   : > { %p1633_p0 = pnand %p1632_p12, %p1628_p4 }
 0x13b   : > { %1636 = shalt.err (!%p1633_p0)
}
 0x13c   : > { %s2408_s25 = sld [smem:[#allocation37_spill]]  ;;  %s1657_s28 = scalar_lea.hbm %s2404_s2, 32 }
 0x13d   : > { %1272 = dma.vmem_to_hbm [thread:$0]  (%p2041_p6), %s2182_s9, 256, %s2187_s14, %s771_s11, %s1816_s7, %s1816_s7, %s1817_s0  }
 0x142   : > { %s2409_s17 = int_to_ptr.hbm [resolvable:$true] %s2408_s25 }
 0x143   : > { %s1651_s18 = sshra.s32 %s2409_s17, 4  ;;  %s1652_s18 = int_to_ptr.hbm [resolvable:$true] %s1651_s18 }
 0x144   : > { %s1653_s22 = scalar_lea.hbm %s1652_s18, 16  ;;  %p1658_p3 = scmp.lt.s32.totalorder %s1652_s18, %s2404_s2 }
 0x145   : > { %p1654_p13 = scmp.ne.s32.totalorder %s1652_s18, %s1653_s22  ;;  %p1659_p5 = scmp.lt.s32.totalorder %s1657_s28, %s1653_s22 }
 0x147   : > { %p1655_p2 = pnand %p1654_p13, %p2052_p8  ;;  %p1660_p4 = por %p1659_p5, %p1658_p3 }
 0x149   : > { %p1656_p11 = pneg %p1655_p2 }
 0x14b   : > { %p1661_p1 = pnand %p1660_p4, %p1656_p11 }
 0x14d   : > { %1664 = shalt.err (!%p1661_p1)
}
 0x14e   : > { %s2410_s9 = smov %s2409_s17  ;;  %s2411_s14 = sand.u32 1, %s1771_s10  }
 0x14f   : > { %1274 = dma.vmem_to_hbm [thread:$0]  (%p2052_p8), %s2189_s1, 256, %s2410_s9, %s2199_s4, %s1816_s7, %s1816_s7, %s1817_s0  }
 0x150   : > { %s786_s11 = scalar_lea.sflag [#allocation17], %s2411_s14  ;;  %s1679_s21 = sshra.s32 %s854_s27, 4  ;;  %s1680_s21 = int_to_ptr.hbm [resolvable:$true] %s1679_s21 }
 0x151   : > { %s1681_s8 = scalar_lea.hbm %s1680_s21, 16  ;;  %s1685_s18 = scalar_lea.hbm %s2405_s24, 32 }
 0x152   : > { %p1682_p6 = scmp.ne.s32.totalorder %s1680_s21, %s1681_s8  ;;  %p1686_p0 = scmp.lt.s32.totalorder %s1680_s21, %s2405_s24 }
 0x153   : > { %p1687_p13 = scmp.lt.s32.totalorder %s1685_s18, %s1681_s8 }
 0x154   : > { %p1683_p9 = pnand %p1682_p6, %p2052_p8 }
 0x155   : > { %p1688_p2 = por %p1687_p13, %p1686_p0 }
 0x156   : > { %p1684_p12 = pneg %p1683_p9 }
 0x158   : > { %p1689_p11 = pnand %p1688_p2, %p1684_p12 }
 0x15a   : > { %1692 = shalt.err (!%p1689_p11)
}
 0x15b   : > { %1275 = dma.vmem_to_hbm [thread:$0]  (%p2052_p8), %s2221_s3, 256, %s854_s27, %s786_s11, %s1816_s7, %s1816_s7, %s1817_s0  }
 0x15c PF: > { %p1318_p3 = scmp.ge.s32.totalorder %s1807_s19, 2  ;;  %s868_s4 = sand.u32 1, %s1779_s12  }
 0x15d   : > { %s869_s23 = scalar_lea.sflag [#allocation4], %s868_s4 }
 0x15e   : > { %p1301_p5 = pnand %p1318_p3, %p2045_p7 }
 0x160   : > { %p1302_p4 = pneg %p1301_p5 }
 0x162   : > { %1754 = dma.done.wait (%p1302_p4), %s869_s23, 256  }
 0x163   : > { %1756 = vsyncadd (%p1302_p4), %s869_s23, 4294967040  ;;  %s2413_s16 = sadd.s32 4294967294, %s1807_s19   ;;  %p1304_p1 = pnand %p1318_p3, %p2056_p10 }
 0x164   : > { %s878_s28 = sand.u32 1, %s2413_s16  }
 0x165   : > { %p1305_p6 = pneg %p1304_p1  ;;  %s879_s3 = scalar_lea.sflag [#allocation14], %s878_s28 }
 0x167   : > { %1758 = dma.done.wait (%p1305_p6), %s879_s3, 512  }
 0x168   : > { %1760 = vsyncadd (%p1305_p6), %s879_s3, 4294966784  ;;  %s2415_s27 = sld [smem:[#allocation25_spill]] }
 0x16e   : > { %s898_s7 = sand.u32 1, %s2415_s27  }
 0x16f   : > { %s899_s0 = scalar_lea.sflag [#allocation17], %s898_s7 }
 0x170   : > { %1762 = dma.done.wait (%p1305_p6), %s899_s0, 256  }
 0x171   : > { %1764 = vsyncadd (%p1305_p6), %s899_s0, 4294967040  ;;  %s34_s19 = sadd.s32 1, %s1807_s19   ;;  %s2416_s12 = sld [smem:[#allocation26_spill]] }
 0x172   : > { %p31_p7 = scmp.ge.s32.totalorder %s34_s19, 10   ;;  %s2417_s11 = sld [smem:[#allocation34_spill]] }
 0x173   : > { %s2418_s6 = sld [smem:[#allocation27_spill]]  ;;  %s2424_s30 = smov %s1771_s10 }
 0x174   : > { %s2419_s14 = sld [smem:[#allocation33_spill]] }
 0x175   : > { %s2420_s15 = sld [smem:[#allocation29_spill]]  ;;  %33 = sbr.rel (!%p31_p7) target bundleno = 25 (0x19), region = 184 }
 0x176   : > { %s2421_s16 = sld [smem:[#allocation30_spill]] }
 0x177   : > { %s2422_s17 = sld [smem:[#allocation31_spill]]  ;;  %s2425_s10 = smov %s2416_s12 }
 0x178   : > { %s2423_s18 = sld [smem:[#allocation32_spill]]  ;;  %s2426_s12 = smov %s1783_s13 }
 0x179   : > { %s2427_s13 = smov %s2418_s6 }
 0x17a   :  { %905 = vsyncpa [#allocation3], 1 }
 0x17b   :  { %907 = vsyncpa [#allocation3 + $0x1], 1 }
 0x17c   :  { %908 = vsyncpa [#allocation8], 1 }
 0x17d   :  { %909 = vsyncpa [#allocation4], 1 }
 0x17e   :  { %911 = vsyncpa [#allocation4 + $0x1], 1 }
 0x17f   :  { %912 = vsyncpa [#allocation14], 1 }
 0x180   :  { %914 = vsyncpa [#allocation14 + $0x1], 1 }
 0x181   :  { %915 = vsyncpa [#allocation17], 1 }
 0x182   :  { %917 = vsyncpa [#allocation17 + $0x1], 1 }
 0x183   :  { %918 = vsyncpa [#allocation5], 1 }
 0x184   :  { %920 = vsyncpa [#allocation5 + $0x1], 1 }

</bundles_post_ra>
